<compile_context>
chip_gen: v7x
topology: tpu7x:2x2x1
jax: 0.10.0
libtpu: 0.0.40
codegen_flags: <defaults>
</compile_context>

<pallas_src>
import jax
import jax.numpy as jnp
from jax.experimental import pallas as pl
from jax.experimental.pallas import tpu as pltpu


_TILE_B_CAP = 512  # rows per grid step; big tile amortizes ~0.35 us/step overhead


def _make_fused_mlp_kernel(n_layers):
    """Build a fused [Linear->ReLU]*(n-1) -> Linear -> Softmax(-1) kernel body."""

    def kernel(*refs):
        x_ref = refs[0]
        out_ref = refs[-1]
        p_refs = refs[1:-1]  # (w0, b0, w1, b1, ..., w_{n-1}, b_{n-1})

        y = x_ref[...].astype(jnp.float32)
        # Static Python unroll over layers: traced once, all weights resident in VMEM,
        # intermediates never round-trip through HBM.
        for li in range(n_layers):
            w = p_refs[2 * li][...]
            b = p_refs[2 * li + 1][...]          # (1, Dout) -> broadcasts over batch
            y = jnp.dot(y, w, preferred_element_type=jnp.float32) + b
            if li < n_layers - 1:
                y = jnp.maximum(y, 0.0)

        # Numerically stable softmax over the feature axis.  Lane-padded logits carry a
        # -1e30 bias, so exp(pad - m) underflows to exactly 0 and they do not perturb
        # the denominator.
        m = jnp.max(y, axis=-1, keepdims=True)
        e = jnp.exp(y - m)
        denom = jnp.sum(e, axis=-1, keepdims=True)
        # Approx reciprocal runs on the EUP (separate VLIW slot) instead of a VPU divide.
        out_ref[...] = (e * pl.reciprocal(denom, approx=True)).astype(out_ref.dtype)

    return kernel


def _choose_tiling(batch):
    """Pick (tile_b, grid) for the batch axis.

    - batch <= cap: one full-batch block (full-extent blocks need no 8-row alignment,
      so no jnp.pad copy in the hot path).
    - batch > cap: 8-row-aligned tiles, grid count kept even so v7x's two TensorCores
      each get half the steps; the last block may be partial (edge handling by Pallas).
    """
    if batch <= _TILE_B_CAP:
        return batch, 1
    grid = pl.cdiv(batch, _TILE_B_CAP)
    if grid % 2:
        grid += 1                                   # even grid -> both v7x TCs busy
    tile_b = ((pl.cdiv(batch, grid) + 7) // 8) * 8  # sublane-aligned
    return tile_b, pl.cdiv(batch, tile_b)


def fc_forward(x, params, out_dim):
    """Fused forward pass.

    x: (B, Din) float32.
    params: list of (w_t, b) with w_t: (Din_i, Dout_i), b: (1, Dout_i); the final
            layer is lane-padded to a multiple of 128.
    out_dim: true (unpadded) output width; result is sliced to (B, out_dim).
    """
    n_layers = len(params)
    B, Din = x.shape
    Dout_pad = params[-1][0].shape[1]  # lane-dense padded output width (>= 128)

    tile_b, grid = _choose_tiling(B)

    # BlockSpecs: x/out are tiled over the batch grid axis; every weight/bias is a
    # single full-array block pinned at (0, 0) so it is fetched once and stays in VMEM.
    in_specs = [pl.BlockSpec((tile_b, Din), lambda i: (i, 0))]
    flat_params = []
    for (w_t, b) in params:
        din_i, dout_i = w_t.shape
        in_specs.append(pl.BlockSpec((din_i, dout_i), lambda i: (0, 0)))
        in_specs.append(pl.BlockSpec((1, dout_i), lambda i: (0, 0)))
        flat_params.append(w_t)
        flat_params.append(b)

    out = pl.pallas_call(
        _make_fused_mlp_kernel(n_layers),
        out_shape=jax.ShapeDtypeStruct((B, Dout_pad), jnp.float32),
        grid=(grid,),
        in_specs=in_specs,
        # Lane-dense (multiple-of-128) output block -> unmasked vector stores.
        out_specs=pl.BlockSpec((tile_b, Dout_pad), lambda i: (i, 0)),
        compiler_params=pltpu.CompilerParams(
            # Batch tiles are independent -> shardable across TensorCores (v7x megacore).
            dimension_semantics=("parallel",)
        ),
    )(x, *flat_params)

    return out[:, :out_dim]


_fc_forward_jit = jax.jit(fc_forward, static_argnums=2)


class FC:
    """JAX/Pallas port of the PyTorch FC module (fused single-kernel forward)."""

    def __init__(self, key, *sizes):
        self.sizes = sizes
        self.out_dim = sizes[-1]
        self.params = []      # kernel params (final layer lane-padded to 128)
        self.ref_params = []  # unpadded params for the pure-JAX reference
        n = len(sizes) - 1
        for i in range(n):
            key, wk, bk = jax.random.split(key, 3)
            fan_in = sizes[i]
            bound = 1.0 / (fan_in ** 0.5)
            # PyTorch nn.Linear default init: U(-1/sqrt(fan_in), 1/sqrt(fan_in)).
            w = jax.random.uniform(
                wk, (sizes[i + 1], sizes[i]), jnp.float32, -bound, bound
            )
            b = jax.random.uniform(
                bk, (sizes[i + 1],), jnp.float32, -bound, bound
            )
            # Glue: pre-transpose to (in, out), bias as a (1, out) row.
            w_t = w.T
            b_row = b.reshape(1, -1)
            self.ref_params.append((w_t, b_row))
            if i == n - 1:
                # Lane-dense padding of the classifier head: zero weight columns and
                # -1e30 bias so padded logits contribute exp()==0 to the softmax.
                dout = sizes[i + 1]
                dout_pad = max(((dout + 127) // 128) * 128, 128)
                if dout_pad != dout:
                    w_t = jnp.pad(w_t, ((0, 0), (0, dout_pad - dout)))
                    b_row = jnp.pad(
                        b_row, ((0, 0), (0, dout_pad - dout)), constant_values=-1e30
                    )
            self.params.append((w_t, b_row))

    def __call__(self, x):
        return _fc_forward_jit(x, self.params, self.out_dim)


def _reference_forward(x, params):
    """Pure-JAX reference for correctness checking (unpadded params)."""
    y = x
    n = len(params)
    for li, (w_t, b) in enumerate(params):
        y = y @ w_t + b
        if li < n - 1:
            y = jnp.maximum(y, 0.0)
    return jax.nn.softmax(y, axis=1)


if __name__ == "__main__":
    key = jax.random.PRNGKey(0)
    key, xk = jax.random.split(key)

    # FC(32, 64, 48, 10): two hidden Linear+ReLU layers, final Linear+Softmax(1).
    sizes = (32, 64, 48, 10)
    batch = 8
    model = FC(key, *sizes)

    x = jax.random.normal(xk, (batch, sizes[0]), jnp.float32)

    out = model(x)
    out = jax.block_until_ready(out)

    assert out.shape == (batch, sizes[-1])

    # Sanity: softmax rows sum to ~1 (approx-reciprocal -> relaxed tolerance).
    row_sums = jnp.sum(out, axis=1)
    assert bool(jnp.all(jnp.abs(row_sums - 1.0) < 1e-2)), row_sums

    # Compare against pure-JAX reference.
    ref = _reference_forward(x, model.ref_params)
    max_err = float(jnp.max(jnp.abs(out - ref)))
    assert max_err < 1e-2, f"max abs error vs reference: {max_err}"

    print("KERNEL_OK")
</pallas_src>

<mosaic_0001>
module attributes {stable_mosaic.version = 11 : i64} {
  func.func @kernel(%arg0: i32, %arg1: memref<8x32xf32, #tpu.memory_space<vmem>>, %arg2: memref<32x64xf32, #tpu.memory_space<vmem>>, %arg3: memref<1x64xf32, #tpu.memory_space<vmem>>, %arg4: memref<64x48xf32, #tpu.memory_space<vmem>>, %arg5: memref<1x48xf32, #tpu.memory_space<vmem>>, %arg6: memref<48x128xf32, #tpu.memory_space<vmem>>, %arg7: memref<1x128xf32, #tpu.memory_space<vmem>>, %arg8: memref<8x128xf32, #tpu.memory_space<vmem>>) attributes {dimension_semantics = [#tpu.dimension_semantics<parallel>], iteration_bounds = array<i64: 1>, scalar_prefetch = 0 : i64, scratch_operands = 0 : i64, tpu.core_type = #tpu.core_type<tc>, window_params = [{transform_indices = @transform_0, window_bounds = array<i64: 8, 32>}, {pipeline_mode = #tpu.pipeline_mode<synchronous>, transform_indices = @transform_1, window_bounds = array<i64: 32, 64>}, {pipeline_mode = #tpu.pipeline_mode<synchronous>, transform_indices = @transform_2, window_bounds = array<i64: 1, 64>}, {pipeline_mode = #tpu.pipeline_mode<synchronous>, transform_indices = @transform_3, window_bounds = array<i64: 64, 48>}, {pipeline_mode = #tpu.pipeline_mode<synchronous>, transform_indices = @transform_4, window_bounds = array<i64: 1, 48>}, {pipeline_mode = #tpu.pipeline_mode<synchronous>, transform_indices = @transform_5, window_bounds = array<i64: 48, 128>}, {pipeline_mode = #tpu.pipeline_mode<synchronous>, transform_indices = @transform_6, window_bounds = array<i64: 1, 128>}, {transform_indices = @transform_7, window_bounds = array<i64: 8, 128>}]} {
    %c0 = arith.constant 0 : index
    %c0_0 = arith.constant 0 : index
    %0 = vector.load %arg1[%c0, %c0_0] : memref<8x32xf32, #tpu.memory_space<vmem>>, vector<8x32xf32>
    %c0_1 = arith.constant 0 : index
    %c0_2 = arith.constant 0 : index
    %1 = vector.load %arg2[%c0_1, %c0_2] : memref<32x64xf32, #tpu.memory_space<vmem>>, vector<32x64xf32>
    %c0_3 = arith.constant 0 : index
    %c0_4 = arith.constant 0 : index
    %2 = vector.load %arg3[%c0_3, %c0_4] : memref<1x64xf32, #tpu.memory_space<vmem>>, vector<1x64xf32>
    %cst = arith.constant dense<0.000000e+00> : vector<8x64xf32>
    %3 = tpu.matmul %0, %1, %cst {dimension_numbers = #tpu.dot_dimension_numbers<[1], [0], [0], [1], [0, 0, 1, 1], [], []>} : vector<8x32xf32>, vector<32x64xf32>, vector<8x64xf32> -> vector<8x64xf32>
    %4 = vector.broadcast %2 : vector<1x64xf32> to vector<8x64xf32>
    %5 = arith.addf %3, %4 : vector<8x64xf32>
    %cst_5 = arith.constant 0.000000e+00 : f32
    %6 = vector.broadcast %cst_5 : f32 to vector<8x64xf32>
    %7 = arith.maximumf %5, %6 : vector<8x64xf32>
    %c0_6 = arith.constant 0 : index
    %c0_7 = arith.constant 0 : index
    %8 = vector.load %arg4[%c0_6, %c0_7] : memref<64x48xf32, #tpu.memory_space<vmem>>, vector<64x48xf32>
    %c0_8 = arith.constant 0 : index
    %c0_9 = arith.constant 0 : index
    %9 = vector.load %arg5[%c0_8, %c0_9] : memref<1x48xf32, #tpu.memory_space<vmem>>, vector<1x48xf32>
    %cst_10 = arith.constant dense<0.000000e+00> : vector<8x48xf32>
    %10 = tpu.matmul %7, %8, %cst_10 {dimension_numbers = #tpu.dot_dimension_numbers<[1], [0], [0], [1], [0, 0, 1, 1], [], []>} : vector<8x64xf32>, vector<64x48xf32>, vector<8x48xf32> -> vector<8x48xf32>
    %11 = vector.broadcast %9 : vector<1x48xf32> to vector<8x48xf32>
    %12 = arith.addf %10, %11 : vector<8x48xf32>
    %cst_11 = arith.constant 0.000000e+00 : f32
    %13 = vector.broadcast %cst_11 : f32 to vector<8x48xf32>
    %14 = arith.maximumf %12, %13 : vector<8x48xf32>
    %c0_12 = arith.constant 0 : index
    %c0_13 = arith.constant 0 : index
    %15 = vector.load %arg6[%c0_12, %c0_13] : memref<48x128xf32, #tpu.memory_space<vmem>>, vector<48x128xf32>
    %c0_14 = arith.constant 0 : index
    %c0_15 = arith.constant 0 : index
    %16 = vector.load %arg7[%c0_14, %c0_15] : memref<1x128xf32, #tpu.memory_space<vmem>>, vector<1x128xf32>
    %cst_16 = arith.constant dense<0.000000e+00> : vector<8x128xf32>
    %17 = tpu.matmul %14, %15, %cst_16 {dimension_numbers = #tpu.dot_dimension_numbers<[1], [0], [0], [1], [0, 0, 1, 1], [], []>} : vector<8x48xf32>, vector<48x128xf32>, vector<8x128xf32> -> vector<8x128xf32>
    %18 = vector.broadcast %16 : vector<1x128xf32> to vector<8x128xf32>
    %19 = arith.addf %17, %18 : vector<8x128xf32>
    %cst_17 = arith.constant dense<0xFF800000> : vector<8xf32>
    %20 = vector.multi_reduction <maximumf>, %19, %cst_17 [1] : vector<8x128xf32> to vector<8xf32>
    %21 = vector.shape_cast %20 : vector<8xf32> to vector<8x1xf32>
    %22 = vector.broadcast %21 : vector<8x1xf32> to vector<8x128xf32>
    %23 = arith.subf %19, %22 : vector<8x128xf32>
    %24 = math.exp %23 : vector<8x128xf32>
    %cst_18 = arith.constant dense<0.000000e+00> : vector<8xf32>
    %25 = vector.multi_reduction <add>, %24, %cst_18 [1] : vector<8x128xf32> to vector<8xf32>
    %26 = vector.shape_cast %25 : vector<8xf32> to vector<8x1xf32>
    %27 = tpu.reciprocal %26 {approx = true} : vector<8x1xf32> -> vector<8x1xf32>
    %28 = vector.broadcast %27 : vector<8x1xf32> to vector<8x128xf32>
    %29 = arith.mulf %24, %28 : vector<8x128xf32>
    %c0_19 = arith.constant 0 : index
    %c0_20 = arith.constant 0 : index
    %30 = vector.load %arg8[%c0_19, %c0_20] : memref<8x128xf32, #tpu.memory_space<vmem>>, vector<8x128xf32>
    tpu.vector_store %arg8[%c0_19, %c0_20], %29 {strides = array<i32>} : memref<8x128xf32, #tpu.memory_space<vmem>>, vector<8x128xf32>,
    return
  }
  func.func @transform_0(%arg0: i32) -> (i32, i32) {
    %c0_i32 = arith.constant 0 : i32
    %c0_i32_0 = arith.constant 0 : i32
    return %arg0, %c0_i32 : i32, i32
  }
  func.func @transform_1(%arg0: i32) -> (i32, i32) {
    %c0_i32 = arith.constant 0 : i32
    %c0_i32_0 = arith.constant 0 : i32
    %c0_i32_1 = arith.constant 0 : i32
    return %c0_i32, %c0_i32_0 : i32, i32
  }
  func.func @transform_2(%arg0: i32) -> (i32, i32) {
    %c0_i32 = arith.constant 0 : i32
    %c0_i32_0 = arith.constant 0 : i32
    %c0_i32_1 = arith.constant 0 : i32
    return %c0_i32, %c0_i32_0 : i32, i32
  }
  func.func @transform_3(%arg0: i32) -> (i32, i32) {
    %c0_i32 = arith.constant 0 : i32
    %c0_i32_0 = arith.constant 0 : i32
    %c0_i32_1 = arith.constant 0 : i32
    return %c0_i32, %c0_i32_0 : i32, i32
  }
  func.func @transform_4(%arg0: i32) -> (i32, i32) {
    %c0_i32 = arith.constant 0 : i32
    %c0_i32_0 = arith.constant 0 : i32
    %c0_i32_1 = arith.constant 0 : i32
    return %c0_i32, %c0_i32_0 : i32, i32
  }
  func.func @transform_5(%arg0: i32) -> (i32, i32) {
    %c0_i32 = arith.constant 0 : i32
    %c0_i32_0 = arith.constant 0 : i32
    %c0_i32_1 = arith.constant 0 : i32
    return %c0_i32, %c0_i32_0 : i32, i32
  }
  func.func @transform_6(%arg0: i32) -> (i32, i32) {
    %c0_i32 = arith.constant 0 : i32
    %c0_i32_0 = arith.constant 0 : i32
    %c0_i32_1 = arith.constant 0 : i32
    return %c0_i32, %c0_i32_0 : i32, i32
  }
  func.func @transform_7(%arg0: i32) -> (i32, i32) {
    %c0_i32 = arith.constant 0 : i32
    %c0_i32_0 = arith.constant 0 : i32
    return %arg0, %c0_i32 : i32, i32
  }
}

</mosaic_0001>

<bundles_post_ra>
// kernel: fc_forward.1
= control target key start
LH: loop header
LB: loop body
LE: loop exit
PB: predicated region body
PF: predicated region fallthrough
CT: control target
= control target key end

     0   :  { %v446_v3 = vmov 0.0|0.0   ;;  %vm447_vm0 = vmmov 0   ;;  %v448_v6 = vmov 0.0   ;;  %s571_s0 = inlined_call_operand.vmem [shape: f32[8,32], index: 0, kind: input, shape index: {}]   ;;  %s572_s1 = inlined_call_operand.vmem [shape: f32[32,64], index: 1, kind: input, shape index: {}]   ;;  %s573_s2 = inlined_call_operand.vmem [shape: f32[1,64], index: 2, kind: input, shape index: {}]   ;;  %s574_s3 = inlined_call_operand.vmem [shape: f32[64,48], index: 3, kind: input, shape index: {}]   ;;  %s575_s4 = inlined_call_operand.vmem [shape: f32[1,48], index: 4, kind: input, shape index: {}]   ;;  %s576_s5 = inlined_call_operand.vmem [shape: f32[48,128], index: 5, kind: input, shape index: {}]   ;;  %s577_s6 = inlined_call_operand.vmem [shape: f32[1,128], index: 6, kind: input, shape index: {}]   ;;  %s578_s7 = inlined_call_operand.hbm [shape: f32[8,128], index: 7, kind: output, shape index: {}]  }
   0x1   :  { %v28_v0 = vld [vmem:[%s572_s1] sm:$0xff]  ;;  %v29_v1 = vld [vmem:[%s572_s1 + $0x8] sm:$0xff]  ;;  %v30_v2 = vld [vmem:[%s572_s1 + $0x10] sm:$0xff]  ;;  %387 = vmatprep.subr.bf16.mxu0 %v446_v3  ;;  %350 = vmatprep.mubr.msk.f32.mxu0 %vm447_vm0, %v448_v6 }
   0x2   :  { %v388_v4 = vpack.c.bf16 %v29_v1, %v28_v0  ;;  %v31_v5 = vld [vmem:[%s572_s1 + $0x18] sm:$0xff]  ;;  %v114_v7 = vld [vmem:[%s574_s3] sm:$0xff]  ;;  %393 = vmatprep.subr.bf16.mxu1 %v446_v3  ;;  %v115_v8 = vld [vmem:[%s574_s3 + $0x8] sm:$0xff]  ;;  %369 = vmatprep.mubr.msk.f32.mxu1 %vm447_vm0, %v448_v6 }
   0x3   :  { %v116_v9 = vld [vmem:[%s574_s3 + $0x10] sm:$0xff]  ;;  %v117_v10 = vld [vmem:[%s574_s3 + $0x18] sm:$0xff]  ;;  %v391_v11 = vpack.c.bf16 %v31_v5, %v30_v2  ;;  %v394_v12 = vpack.c.bf16 %v115_v8, %v114_v7 }
   0x4   :  { %389 = vmatpush3.bf16.msra.mxu0 %v388_v4 }
   0x5   :  { %390 = vmatprep.subr.bf16.mxu0 %v446_v3 }
   0x6   :  { %12 = vsyncpa [#allocation3], 0  ;;  %395 = vmatpush3.bf16.msra.mxu1 %v394_v12  ;;  %v397_v13 = vpack.c.bf16 %v117_v10, %v116_v9  ;;  %v118_v14 = vld [vmem:[%s574_s3 + $0x20] sm:$0xff]  ;;  %v119_v15 = vld [vmem:[%s574_s3 + $0x28] sm:$0xff]  ;;  %vm39_vm1 = vcmask 261120   ;;  %vm129_vm2 = vcmask 523264  }
   0x7   :  { %396 = vmatprep.subr.bf16.mxu1 %v446_v3  ;;  %v27_v16 = vld [vmem:[%s571_s0] sm:$0xff]  ;;  %v400_v17 = vpack.c.bf16 %v119_v15, %v118_v14  ;;  %v120_v18 = vld [vmem:[%s574_s3 + $0x30] sm:$0xff]  ;;  %v121_v19 = vld [vmem:[%s574_s3 + $0x38] sm:$0xff]  ;;  %vm217_vm3 = vcmask 392192  }
   0x8   :  { %392 = vmatpush3.bf16.msra.mxu0 %v391_v11  ;;  %v403_v20 = vpack.c.bf16 %v121_v19, %v120_v18  ;;  %v204_v21 = vld [vmem:[%s576_s5] sm:$0xff]  ;;  %v205_v22 = vld [vmem:[%s576_s5 + $0x8] sm:$0xff]  ;;  %v206_v23 = vld [vmem:[%s576_s5 + $0x10] sm:$0xff] }
   0x9   :  { %405 = vmatprep.subr.bf16.mxu0 %v446_v3  ;;  %v406_v24 = vpack.c.bf16 %v205_v22, %v204_v21  ;;  %v207_v25 = vld [vmem:[%s576_s5 + $0x18] sm:$0xff]  ;;  %v315_v27 = vld [vmem:[%s573_s2] ss:$0 sm:$0xff]  ;;  %v209_v33 = vld [vmem:[%s576_s5 + $0x28] sm:$0xff] }
   0xa   :  { %398 = vmatpush3.bf16.msra.mxu1 %v397_v13  ;;  %v409_v26 = vpack.c.bf16 %v207_v25, %v206_v23  ;;  %v208_v32 = vld [vmem:[%s576_s5 + $0x20] sm:$0xff] }
   0xb   :  { %351 = vmatmul.mubr.msk.f32.vlgmr.msra.gmra.mrb[0].mxu0 %vm39_vm1, %v27_v16  ;;  %399 = vmatprep.subr.bf16.mxu1 %v446_v3  ;;  %v412_v34 = vpack.c.bf16 %v209_v33, %v208_v32  ;;  %v317_v35 = vld [vmem:[%s575_s4] ss:$0 sm:$0xff]  ;;  %s449_s4 = smov [#allocation2]  }
   0xc   :  { %384 = vmatprep.mubr.msk.f32.mxu0 %vm447_vm0, %v448_v6  ;;  %407 = vmatpush3.bf16.msra.mxu0 %v406_v24  ;;  %v319_v40 = vld [vmem:[%s577_s6] ss:$0 sm:$0xff]  ;;  %s307_s5 = sshll.u32 %s449_s4, 4  ;;  %s308_s5 = int_to_ptr.vmem [resolvable:$true] %s307_s5 }
   0xd   :  { %408 = vmatprep.subr.bf16.mxu0 %v446_v3  ;;  %s422_s17 = scalar_lea.vmem %s308_s5, 128  ;;  %p427_p1 = scmp.lt.s32.totalorder %s308_s5, %s308_s5 }
   0xe   :  { %401 = vmatpush3.bf16.msra.mxu1 %v400_v17  ;;  %p423_p0 = scmp.ne.s32.totalorder %s308_s5, %s422_s17  ;;  %p428_p2 = scmp.lt.s32.totalorder %s422_s17, %s422_s17 }
   0xf   :  { %402 = vmatprep.subr.bf16.mxu1 %v446_v3 }
  0x10   :  { %410 = vmatpush3.bf16.msra.mxu0 %v409_v26  ;;  %p429_p3 = por %p428_p2, %p427_p1 }
  0x11   :  { %411 = vmatprep.subr.bf16.mxu0 %v446_v3 }
  0x12   :  { %404 = vmatpush3.bf16.msra.mxu1 %v403_v20  ;;  %p430_p4 = pnand %p429_p3, %p423_p0 }
  0x14   :  { %413 = vmatpush3.bf16.msra.mxu0 %v412_v34 }
  0xde   :  { %v109_v28 = vpop.f32.mrb[0].mxu0 }
  0xdf   :  { %v110_v29 = vadd.f32 %v315_v27, %v109_v28  ;;  %v352_v30 = vpop.f32.mrb[1].mxu0 }
  0xe1   :  { %v113_v31 = vmax.f32 %v110_v29, 0.0 }
  0xe3   :  { %370 = vmatmul.mubr.msk.f32.vlgmr.msra.gmra.mrb[0].mxu1 %vm129_vm2, %v113_v31 }
 0x1b6   :  { %v199_v36 = vpop.f32.mrb[0].mxu1 }
 0x1b7   :  { %v200_v37 = vadd.f32 %v317_v35, %v199_v36  ;;  %v371_v38 = vpop.f32.mrb[1].mxu1 }
 0x1b9   :  { %v203_v39 = vmax.f32 %v200_v37, 0.0 }
 0x1bb   :  { %385 = vmatmul.mubr.msk.f32.vlgmr.msra.gmra.mrb[2].mxu0 %vm217_vm3, %v203_v39 }
 0x28e   :  { %v287_v41 = vpop.f32.mrb[2].mxu0 }
 0x28f   :  { %v288_v42 = vadd.f32 %v319_v40, %v287_v41  ;;  %v386_v43 = vpop.f32.mrb[3].mxu0 }
 0x291   :  { %291 = vmax.xlane.f32.xlu0 %v288_v42 }
 0x31e   :  { %v292_v44 = vpop.xlane.xlu0 %291 }
 0x31f   :  { %v293_v45 = vsub.f32 %v288_v42, %v292_v44 }
 0x321   :  { %v294_v46 = vmul.f32 1.442695, %v293_v45 }
 0x323   :  { %418 = vpow2.f32 %v294_v46 }
 0x32d   :  { %v419_v47 = vpop.eup %418 }
 0x32e   :  { %296 = vadd.xlane.f32.xlu0 %v419_v47 }
 0x3bb   :  { %v297_v48 = vpop.xlane.xlu0 %296 }
 0x3bc   :  { %420 = vrcp.f32 %v297_v48 }
 0x3c6   :  { %v421_v49 = vpop.eup %420 }
 0x3c7   :  { %v299_v50 = vmul.f32 %v421_v49, %v419_v47 }
 0x3c9   :  { %300 = vst [vmem:[#allocation2] sm:$0xff] %v299_v50 }
 0x3ca   :  { %433 = shalt.err (!%p430_p4)
}
 0x3cb   :  { %s434_s19 = scalar_lea.hbm %s578_s7, 128 }
 0x3cc   :  { %p435_p5 = scmp.ne.s32.totalorder %s578_s7, %s434_s19  ;;  %p438_p6 = scmp.lt.u32.totalorder %s434_s19, %s578_s7 }
 0x3ce   :  { %p440_p7 = pnand %p438_p6, %p435_p5 }
 0x3d0   :  { %443 = shalt.err (!%p440_p7)
}
 0x3d1   :  { %310 = dma.vmem_to_hbm [thread:$0]  %s308_s5, 128, %s578_s7, [#allocation3]  }
 0x3d2   :  { %444 = dma.done.wait [#allocation3], 128  }
 0x3d3   :  { %445 = vsyncadd [#allocation3], 4294967168 }
 0x3d4   :  { %314 = vsyncpa [#allocation3], 1 }

</bundles_post_ra>
